<compile_context>
chip_gen: v6e
topology: v6e:2x2x1
jax: 0.10.0
libtpu: 0.0.40
codegen_flags: <defaults>
</compile_context>

<pallas_src>
import functools

import jax
import jax.numpy as jnp
from jax.experimental import pallas as pl
from jax.experimental.pallas import tpu as pltpu


def _round_up(x, m):
    return ((x + m - 1) // m) * m


def _pick_tile_m(M, tile_m):
    """Prefer a TM that divides M exactly (multiple of 8) -> no tail padding and
    no post-kernel slice copy. Fall back to padding the tail tile otherwise."""
    cap = min(int(tile_m), M)
    cap -= cap % 8
    for d in range(cap, 7, -8):
        if M % d == 0:
            return d, M
    TM = _round_up(min(int(tile_m), max(M, 1)), 8)
    return TM, _round_up(M, TM)


def _vmem_capacity_bytes():
    try:
        return int(pltpu.get_tpu_info().vmem_capacity_bytes)
    except Exception:
        return 64 * 1024 * 1024  # conservative default (v7x per-TC VMEM)


def _patch_embed_kernel(x_ref, w_ref, b_ref, o_ref):
    # x_ref: [TM, K] (streamed), w_ref: [K, E] (resident, single-buffered),
    # b_ref: [1, E] f32 (resident), o_ref: [TM, E] (out_dtype)
    acc = jnp.dot(x_ref[...], w_ref[...], preferred_element_type=jnp.float32)
    o_ref[...] = (acc + b_ref[...]).astype(o_ref.dtype)


def prepare_patch_embed_params(weight, bias, patch_size, compute_dtype=jnp.bfloat16):
    """One-time weight prep (do this OUTSIDE the per-step forward).

    weight: [E, C, P, P] (PyTorch Conv2d OIHW layout), bias: [E].
    Returns (w_mat [K, E] in compute_dtype, b_mat [1, E] f32), K = C*P*P.
    No K/E padding: standard ViT dims are already 128-aligned, and for odd dims
    full-extent blocks avoid the extra pad/unpad HBM copies on this mem-bound op.
    """
    E, C, P, _ = weight.shape
    assert P == patch_size
    K = C * P * P
    w_mat = jnp.transpose(weight.reshape(E, K)).astype(compute_dtype)  # [K, E]
    b_mat = bias.astype(jnp.float32).reshape(1, E)
    return w_mat, b_mat


@functools.partial(
    jax.jit,
    static_argnames=("patch_size", "embed_dim", "out_dtype", "tile_m",
                     "core_parallel", "input_buffer_count"))
def patch_embed_forward(x, w_mat, b_mat, *, patch_size, embed_dim,
                        out_dtype=jnp.bfloat16, tile_m=1024,
                        core_parallel=False, input_buffer_count=2):
    """x: [B, C, H, W] (NCHW, like PyTorch). Returns [B, n_patches, embed_dim]."""
    B, C, H, W = x.shape
    P = patch_size
    gh, gw = H // P, W // P
    n_patches = gh * gw
    M = B * n_patches
    K = C * P * P
    Kw, E = w_mat.shape
    assert Kw == K, "w_mat contraction dim inconsistent with (in_channels, patch_size)"
    assert E == embed_dim, "embed_dim inconsistent with w_mat (see prepare_patch_embed_params)"
    compute_dtype = w_mat.dtype

    # Border pixels not covered by a full patch are dropped (matches Conv2d with
    # kernel=stride=P, i.e. VALID behaviour) — no-op when H, W divisible by P.
    if H != gh * P or W != gw * P:
        x = x[:, :, :gh * P, :gw * P]

    # --- glue: non-overlapping patch extraction (single fused transpose+cast) ---
    # TODO(synk): stream NCHW row-slabs straight into the kernel and do this
    # rearrange in VMEM to eliminate the [M, K] im2col HBM round trip; kept in
    # the wrapper (one f32-read -> bf16-write copy fusion) for robust lowering.
    xp = x.reshape(B, C, gh, P, gw, P)
    xp = jnp.transpose(xp, (0, 2, 4, 1, 3, 5))
    patches = xp.reshape(M, K).astype(compute_dtype)

    # --- M (patch-row) tiling & VMEM budget ---
    in_sz = jnp.dtype(compute_dtype).itemsize
    out_sz = jnp.dtype(out_dtype).itemsize

    def vmem_need(tm):
        return (2 * tm * K * in_sz       # streamed patch tiles (double-buffered)
                + K * E * in_sz          # resident weight (single-buffered)
                + 2 * E * 4              # resident bias
                + 2 * tm * E * out_sz    # output tiles (double-buffered)
                + tm * E * 4)            # f32 accumulator intermediate

    vmem_budget = int(0.8 * _vmem_capacity_bytes())   # headroom for Mosaic scratch
    TM, Mp = _pick_tile_m(M, tile_m)
    while 2 * vmem_need(TM) > vmem_budget and TM > 8:  # 2x margin: internal scratch
        TM, Mp = _pick_tile_m(M, max(8, TM // 2))      # / megacore duplication
    vmem_limit = int(min(max(2 * vmem_need(TM), 32 * 1024 * 1024), vmem_budget))

    if Mp != M:
        patches = jnp.pad(patches, ((0, Mp - M), (0, 0)))

    # Resident (constant index_map) operands: single buffer. Streamed input can
    # optionally be buffered deeper if its DMA shows exposed latency.
    resident_kw, stream_kw = {}, {}
    if hasattr(pl, "Buffered"):
        resident_kw = dict(pipeline_mode=pl.Buffered(buffer_count=1))
        if input_buffer_count != 2:
            stream_kw = dict(pipeline_mode=pl.Buffered(buffer_count=int(input_buffer_count)))

    dim_sem = (pltpu.CORE_PARALLEL,) if core_parallel else (pltpu.PARALLEL,)

    out = pl.pallas_call(
        _patch_embed_kernel,
        out_shape=jax.ShapeDtypeStruct((Mp, E), out_dtype),
        grid_spec=pltpu.PrefetchScalarGridSpec(
            num_scalar_prefetch=0,
            grid=(Mp // TM,),
            in_specs=[
                pl.BlockSpec((TM, K), lambda i: (i, 0), **stream_kw),    # streamed patches
                pl.BlockSpec((K, E), lambda i: (0, 0), **resident_kw),   # resident weight
                pl.BlockSpec((1, E), lambda i: (0, 0), **resident_kw),   # resident bias
            ],
            out_specs=pl.BlockSpec((TM, E), lambda i: (i, 0)),
        ),
        compiler_params=pltpu.CompilerParams(
            dimension_semantics=dim_sem,
            vmem_limit_bytes=vmem_limit,
        ),
    )(patches, w_mat, b_mat)

    if Mp != M:
        out = out[:M]
    return out.reshape(B, n_patches, E)


if __name__ == "__main__":
    # Small shapes consistent with the module: img_size=16, patch_size=4,
    # in_channels=4, embed_dim=32 -> n_patches = (16//4)**2 = 16.
    B, C, H, W = 2, 4, 16, 16
    P = 4
    E = 32

    key = jax.random.PRNGKey(0)
    kx, kw, kb = jax.random.split(key, 3)

    x = jax.random.normal(kx, (B, C, H, W), dtype=jnp.float32)
    fan_in = C * P * P
    weight = jax.random.normal(kw, (E, C, P, P), dtype=jnp.float32) / jnp.sqrt(fan_in)
    bias = jax.random.normal(kb, (E,), dtype=jnp.float32) * 0.01

    # Reference: plain-JAX strided conv (same semantics as PyTorch Conv2d k=P, s=P).
    ref_conv = jax.lax.conv_general_dilated(
        x, weight, window_strides=(P, P), padding="VALID",
        dimension_numbers=("NCHW", "OIHW", "NCHW"),
    ) + bias.reshape(1, E, 1, 1)
    ref = jnp.transpose(ref_conv.reshape(B, E, -1), (0, 2, 1))

    n_patches = (H // P) * (W // P)

    # f32 compute + f32 output: near-exact match to the conv reference.
    w32, b32 = prepare_patch_embed_params(weight, bias, P, compute_dtype=jnp.float32)
    out_f32 = patch_embed_forward(x, w32, b32, patch_size=P, embed_dim=E,
                                  out_dtype=jnp.float32)
    out_f32 = jax.block_until_ready(out_f32)
    assert out_f32.shape == (B, n_patches, E)
    assert jnp.allclose(out_f32, ref, atol=1e-4, rtol=1e-4)

    # bf16 compute + bf16 output (production, mem-bound path): f32 MXU
    # accumulation + f32 bias add before the final cast.
    wbf, bbf = prepare_patch_embed_params(weight, bias, P, compute_dtype=jnp.bfloat16)
    out_bf16 = patch_embed_forward(x, wbf, bbf, patch_size=P, embed_dim=E,
                                   out_dtype=jnp.bfloat16)
    out_bf16 = jax.block_until_ready(out_bf16)
    assert out_bf16.shape == (B, n_patches, E)
    assert out_bf16.dtype == jnp.bfloat16
    assert jnp.allclose(out_bf16.astype(jnp.float32), ref, atol=5e-2, rtol=5e-2)

    print("KERNEL_OK")
</pallas_src>

<mosaic_0001>
module attributes {stable_mosaic.version = 11 : i64} {
  func.func @_patch_embed_kernel(%arg0: i32, %arg1: memref<32x64xf32, #tpu.memory_space<vmem>>, %arg2: memref<64x32xf32, #tpu.memory_space<vmem>>, %arg3: memref<1x32xf32, #tpu.memory_space<vmem>>, %arg4: memref<32x32xf32, #tpu.memory_space<vmem>>) attributes {dimension_semantics = [#tpu.dimension_semantics<parallel>], iteration_bounds = array<i64: 1>, scalar_prefetch = 0 : i64, scratch_operands = 0 : i64, tpu.core_type = #tpu.core_type<tc>, window_params = [{transform_indices = @transform_0, window_bounds = array<i64: 32, 64>}, {pipeline_mode = #tpu.pipeline_mode<synchronous>, transform_indices = @transform_1, window_bounds = array<i64: 64, 32>}, {pipeline_mode = #tpu.pipeline_mode<synchronous>, transform_indices = @transform_2, window_bounds = array<i64: 1, 32>}, {transform_indices = @transform_3, window_bounds = array<i64: 32, 32>}]} {
    %c0 = arith.constant 0 : index
    %c0_0 = arith.constant 0 : index
    %0 = vector.load %arg1[%c0, %c0_0] : memref<32x64xf32, #tpu.memory_space<vmem>>, vector<32x64xf32>
    %c0_1 = arith.constant 0 : index
    %c0_2 = arith.constant 0 : index
    %1 = vector.load %arg2[%c0_1, %c0_2] : memref<64x32xf32, #tpu.memory_space<vmem>>, vector<64x32xf32>
    %cst = arith.constant dense<0.000000e+00> : vector<32x32xf32>
    %2 = tpu.matmul %0, %1, %cst {dimension_numbers = #tpu.dot_dimension_numbers<[1], [0], [0], [1], [0, 0, 1, 1], [], []>} : vector<32x64xf32>, vector<64x32xf32>, vector<32x32xf32> -> vector<32x32xf32>
    %c0_3 = arith.constant 0 : index
    %c0_4 = arith.constant 0 : index
    %3 = vector.load %arg3[%c0_3, %c0_4] : memref<1x32xf32, #tpu.memory_space<vmem>>, vector<1x32xf32>
    %4 = vector.broadcast %3 : vector<1x32xf32> to vector<32x32xf32>
    %5 = arith.addf %2, %4 : vector<32x32xf32>
    %c0_5 = arith.constant 0 : index
    %c0_6 = arith.constant 0 : index
    %6 = vector.load %arg4[%c0_5, %c0_6] : memref<32x32xf32, #tpu.memory_space<vmem>>, vector<32x32xf32>
    tpu.vector_store %arg4[%c0_5, %c0_6], %5 {strides = array<i32>} : memref<32x32xf32, #tpu.memory_space<vmem>>, vector<32x32xf32>,
    return
  }
  func.func @transform_0(%arg0: i32) -> (i32, i32) {
    %c0_i32 = arith.constant 0 : i32
    %c0_i32_0 = arith.constant 0 : i32
    return %arg0, %c0_i32 : i32, i32
  }
  func.func @transform_1(%arg0: i32) -> (i32, i32) {
    %c0_i32 = arith.constant 0 : i32
    %c0_i32_0 = arith.constant 0 : i32
    %c0_i32_1 = arith.constant 0 : i32
    return %c0_i32, %c0_i32_0 : i32, i32
  }
  func.func @transform_2(%arg0: i32) -> (i32, i32) {
    %c0_i32 = arith.constant 0 : i32
    %c0_i32_0 = arith.constant 0 : i32
    %c0_i32_1 = arith.constant 0 : i32
    return %c0_i32, %c0_i32_0 : i32, i32
  }
  func.func @transform_3(%arg0: i32) -> (i32, i32) {
    %c0_i32 = arith.constant 0 : i32
    %c0_i32_0 = arith.constant 0 : i32
    return %arg0, %c0_i32 : i32, i32
  }
}

</mosaic_0001>

<bundles_post_ra>
// kernel: patch_embed_forward.1
= control target key start
LH: loop header
LB: loop body
LE: loop exit
PB: predicated region body
PF: predicated region fallthrough
CT: control target
= control target key end

     0   :  { %s298_s0 = inlined_call_operand.vmem [shape: f32[32,64], index: 0, kind: input, shape index: {}]   ;;  %s299_s1 = inlined_call_operand.vmem [shape: f32[64,32], index: 1, kind: input, shape index: {}]   ;;  %s300_s2 = inlined_call_operand.vmem [shape: f32[1,32], index: 2, kind: input, shape index: {}]   ;;  %s301_s3 = inlined_call_operand.hbm [shape: f32[32,32], index: 3, kind: output, shape index: {}]  }
   0x1   :  { %v26_v0 = vld [vmem:[%s299_s1 + $0x38] sm:$0xff]  ;;  %v25_v1 = vld [vmem:[%s299_s1 + $0x30] sm:$0xff]  ;;  %v24_v2 = vld [vmem:[%s299_s1 + $0x28] sm:$0xff] }
   0x2   :  { %170 = vmatprep.subr.mxu0 %v26_v0  ;;  %192 = vmatprep.subr.mxu1 %v26_v0  ;;  %v23_v3 = vld [vmem:[%s299_s1 + $0x20] sm:$0xff] }
   0x3   :  { %171 = vmatpush3.msra.mxu0 %v26_v0  ;;  %200 = vmatpush3.msra.mxu1 %v26_v0 }
   0x4   :  { %172 = vmatprep.subr.mxu0 %v25_v1  ;;  %193 = vmatprep.subr.mxu1 %v25_v1 }
   0x5   :  { %173 = vmatpush3.msra.mxu0 %v25_v1  ;;  %201 = vmatpush3.msra.mxu1 %v25_v1 }
   0x6   :  { %8 = vsyncpa [#allocation3], 0  ;;  %174 = vmatprep.subr.mxu0 %v24_v2  ;;  %194 = vmatprep.subr.mxu1 %v24_v2  ;;  %v22_v4 = vld [vmem:[%s299_s1 + $0x18] sm:$0xff]  ;;  %v21_v5 = vld [vmem:[%s299_s1 + $0x10] sm:$0xff]  ;;  %vm34_vm0 = vcmask 523264   ;;  %s233_s10 = smov [#allocation2]  }
   0x7   :  { %175 = vmatpush3.msra.mxu0 %v24_v2  ;;  %202 = vmatpush3.msra.mxu1 %v24_v2  ;;  %v20_v6 = vld [vmem:[%s299_s1 + $0x8] sm:$0xff]  ;;  %v19_v7 = vld [vmem:[%s299_s1] sm:$0xff]  ;;  %v17_v9 = vld [vmem:[%s298_s0 + $0x10] sm:$0xff]  ;;  %s142_s11 = sshll.u32 %s233_s10, 4  ;;  %vm132_vm1 = vcmask 261120   ;;  %s143_s11 = int_to_ptr.vmem [resolvable:$true] %s142_s11 }
   0x8   :  { %176 = vmatprep.subr.mxu0 %v23_v3  ;;  %195 = vmatprep.subr.mxu1 %v23_v3  ;;  %v15_v8 = vld [vmem:[%s298_s0] sm:$0xff]  ;;  %v16_v10 = vld [vmem:[%s298_s0 + $0x8] sm:$0xff]  ;;  %v18_v11 = vld [vmem:[%s298_s0 + $0x18] sm:$0xff]  ;;  %s211_s0 = scalar_lea.vmem %s143_s11, 512  ;;  %p216_p1 = scmp.lt.s32.totalorder %s143_s11, %s143_s11 }
   0x9   :  { %177 = vmatpush3.msra.mxu0 %v23_v3  ;;  %203 = vmatpush3.msra.mxu1 %v23_v3  ;;  %v153_v12 = vld [vmem:[%s300_s2] ss:$0 sm:$0xff]  ;;  %p212_p0 = scmp.ne.s32.totalorder %s143_s11, %s211_s0  ;;  %p217_p2 = scmp.lt.s32.totalorder %s211_s0, %s211_s0 }
   0xa   :  { %178 = vmatprep.subr.mxu0 %v22_v4  ;;  %196 = vmatprep.subr.mxu1 %v22_v4 }
   0xb   :  { %179 = vmatpush3.msra.mxu0 %v22_v4  ;;  %204 = vmatpush3.msra.mxu1 %v22_v4  ;;  %p218_p3 = por %p217_p2, %p216_p1 }
   0xc   :  { %180 = vmatprep.subr.mxu0 %v21_v5  ;;  %197 = vmatprep.subr.mxu1 %v21_v5 }
   0xd   :  { %181 = vmatpush3.msra.mxu0 %v21_v5  ;;  %205 = vmatpush3.msra.mxu1 %v21_v5  ;;  %p219_p4 = pnand %p218_p3, %p212_p0 }
   0xe   :  { %182 = vmatprep.subr.mxu0 %v20_v6  ;;  %198 = vmatprep.subr.mxu1 %v20_v6 }
   0xf   :  { %183 = vmatpush3.msra.mxu0 %v20_v6  ;;  %206 = vmatpush3.msra.mxu1 %v20_v6 }
  0x10   :  { %184 = vmatprep.subr.mxu0 %v19_v7  ;;  %199 = vmatprep.subr.mxu1 %v19_v7 }
  0x11   :  { %185 = vmatpush3.msra.mxu0 %v19_v7  ;;  %207 = vmatpush3.msra.mxu1 %v19_v7 }
  0x12   :  { %186 = vmatprep.mubr.msk.f32.mxu0 %vm34_vm0, %v15_v8  ;;  %189 = vmatprep.mubr.msk.f32.mxu1 %vm34_vm0, %v17_v9 }
  0x13   :  { %187 = vmatmul.mubr.msk.f32.vlgmr.msra.gmra.mxu0 %vm34_vm0, %v16_v10  ;;  %190 = vmatmul.mubr.msk.f32.vlgmr.msra.gmra.mxu1 %vm34_vm0, %v18_v11 }
  0xd3   :  { %v188_v13 = vpop.f32.mrf.mxu0  ;;  %v191_v14 = vpop.f32.mrf.mxu1 }
  0xd4   :  { %v119_v15 = vadd.f32 %v188_v13, %v153_v12  ;;  %v129_v16 = vadd.f32 %v191_v14, %v153_v12 }
  0xd5   :  { %v113_v17 = vpop.f32.mrf.mxu0  ;;  %v123_v18 = vpop.f32.mrf.mxu1 }
  0xd6   :  { %134 = vst.msk [vmem:[#allocation2 + $0x8] sm:$0xff] %vm132_vm1, %v119_v15  ;;  %136 = vst.msk [vmem:[#allocation2 + $0x18] sm:$0xff] %vm132_vm1, %v129_v16  ;;  %v114_v19 = vadd.f32 %v153_v12, %v113_v17  ;;  %v124_v20 = vadd.f32 %v153_v12, %v123_v18 }
  0xd8   :  { %133 = vst.msk [vmem:[#allocation2] sm:$0xff] %vm132_vm1, %v114_v19  ;;  %135 = vst.msk [vmem:[#allocation2 + $0x10] sm:$0xff] %vm132_vm1, %v124_v20 }
  0xd9   :  { %222 = shalt.err (!%p219_p4)
}
  0xda   :  { %s234_s2 = smov 128   ;;  %s235_s12 = smov 8  }
  0xdb   :  { %148 = dma.vmem_to_hbm [thread:$0]  %s143_s11, 512, %s301_s3, [#allocation3], %s234_s2, %s234_s2, %s235_s12  }
  0xdc   :  { %231 = dma.done.wait [#allocation3], 512  }
  0xdd   :  { %232 = vsyncadd [#allocation3], 4294966784 }
  0xde   :  { %152 = vsyncpa [#allocation3], 1 }

</bundles_post_ra>
